<compile_context>
chip_gen: v7x
topology: tpu7x:2x2x1
jax: 0.10.0
libtpu: 0.0.40
codegen_flags: <defaults>
</compile_context>

<pallas_src>
import functools
import math

import jax
import jax.numpy as jnp
from jax import lax
from jax.experimental import pallas as pl
from jax.experimental.pallas import tpu as pltpu  # noqa: F401  (kept for TPU backend)


def _imod(x_i32, n):
    """Exact x % n for small non-negative int32 vectors (avoids vector int div)."""
    xf = x_i32.astype(jnp.float32)
    q = jnp.floor((xf + 0.5) * (1.0 / float(n)))
    return xf - q * float(n)


# ---------------------------------------------------------------------------
# Fused kernel: the whole forward in a single invocation (no grid).
# ---------------------------------------------------------------------------
def _mmf_kernel(*refs, nhead, n_batch, has_qpos, has_pos, has_mask):
    f32, bf16 = jnp.float32, jnp.bfloat16
    # Contract x's dim 1 with w's dim 1 (w stays (out, in) as in PyTorch).
    dn = (((1,), (1,)), ((), ()))

    it = iter(refs)
    tgt_ref = next(it)
    qpos_ref = next(it) if has_qpos else None
    mem_ref = next(it)
    pos_ref = next(it) if has_pos else None
    kpm_ref = next(it) if has_mask else None
    win_ref = next(it)
    bin_ref = next(it)
    wo_ref = next(it)
    bo_ref = next(it)
    o_ref = next(it)

    tgt = tgt_ref[...].astype(f32)                              # (L*N, E)
    q_in = (tgt + qpos_ref[...].astype(f32)) if has_qpos else tgt
    mem = mem_ref[...].astype(f32)                              # (S*N, E)
    k_in = (mem + pos_ref[...].astype(f32)) if has_pos else mem

    LN, E = tgt.shape
    SN = mem.shape[0]
    Dh = E // nhead
    scale = 1.0 / math.sqrt(Dh)

    w_in = win_ref[...]                                         # (3E, E) f32
    b_in = bin_ref[...]                                         # (1, 3E) f32

    # q/k/v projections: one MXU matmul each over the whole (seq*batch) slab,
    # bf16 operands with f32 accumulation.
    def proj(x, lo):
        w = w_in[lo:lo + E, :].astype(bf16)
        b = b_in[:, lo:lo + E]
        return lax.dot_general(x.astype(bf16), w, dn,
                               preferred_element_type=f32) + b

    q = proj(q_in, 0) * scale          # scale after the bias add (torch MHA)
    k = proj(k_in, E)
    v = proj(mem, 2 * E)
    q_b, k_b, v_b = q.astype(bf16), k.astype(bf16), v.astype(bf16)

    # Additive score bias (L*N, S*N):
    #   * -1e9 where row batch != col batch (rows r -> n = r % N, from the
    #     contiguous (L,N,E)->(L*N,E) reshape; cols c -> n' = c % N, s = c // N)
    #   * -1e9 on key-padded (n', s) columns.
    r_i = lax.broadcasted_iota(jnp.int32, (LN, SN), 0)
    c_i = lax.broadcasted_iota(jnp.int32, (LN, SN), 1)
    bias = jnp.where(_imod(r_i, n_batch) == _imod(c_i, n_batch), 0.0, -1e9)
    if has_mask:
        kpm = kpm_ref[...].astype(f32)                          # (N, S), 1 = masked
        S = SN // n_batch
        # b_ns[n, c] = kpm[n, c // N]  via a tiny selection matmul (no reshapes).
        s_i = lax.broadcasted_iota(jnp.int32, (S, SN), 0)
        cs_i = lax.broadcasted_iota(jnp.int32, (S, SN), 1)
        d = cs_i - n_batch * s_i
        sel_s = ((d >= 0) & (d < n_batch)).astype(f32)          # (S, SN)
        b_ns = jnp.dot(kpm, sel_s, preferred_element_type=f32)  # (N, SN)
        # kpad[c] = b_ns[c % N, c]
        n_i = lax.broadcasted_iota(jnp.int32, (n_batch, SN), 0)
        cn_i = lax.broadcasted_iota(jnp.int32, (n_batch, SN), 1)
        pick = _imod(cn_i, n_batch) == n_i.astype(f32)
        kpad = jnp.sum(jnp.where(pick, b_ns, 0.0), axis=0, keepdims=True)
        bias = bias + kpad * (-1e9)

    wo_b = wo_ref[...].astype(bf16)                             # (E, E)
    acc = jnp.zeros((LN, E), f32)
    for h in range(nhead):                                      # small, unrolled
        sl = slice(h * Dh, (h + 1) * Dh)
        s = lax.dot_general(q_b[:, sl], k_b[:, sl], dn,
                            preferred_element_type=f32) + bias  # (LN, SN)
        m = jnp.max(s, axis=-1, keepdims=True)
        p = jnp.exp(s - m)
        p = p * pl.reciprocal(jnp.sum(p, axis=-1, keepdims=True), approx=True)
        pv = jnp.dot(p.astype(bf16), v_b[:, sl],
                     preferred_element_type=f32)                # (LN, Dh)
        # Accumulate the output projection per head (no head concatenate).
        acc = acc + lax.dot_general(pv.astype(bf16), wo_b[:, sl], dn,
                                    preferred_element_type=f32)  # (LN, E)

    tgt2 = acc + bo_ref[...]                                    # (LN, E)
    o_ref[...] = (tgt * tgt2).astype(o_ref.dtype)


# ---------------------------------------------------------------------------
# Forward wrapper: jitted, only free reshapes outside the kernel.
# ---------------------------------------------------------------------------
@functools.partial(jax.jit, static_argnames=("nhead",))
def _mmf_impl(tgt, memory, mask, pos, query_pos, w_in, b_in, wo, bo, *, nhead):
    L, N, E = tgt.shape
    S = memory.shape[0]
    LN, SN = L * N, S * N

    has_qpos = query_pos is not None
    has_pos = pos is not None
    has_mask = mask is not None

    # Contiguous (free) reshapes only -- no transposes, no zero tensors.
    args = [tgt.reshape(LN, E)]
    if has_qpos:
        args.append(query_pos.reshape(LN, E))
    args.append(memory.reshape(SN, E))
    if has_pos:
        args.append(pos.reshape(SN, E))
    if has_mask:
        args.append(mask.astype(jnp.float32))
    args += [w_in, b_in.reshape(1, 3 * E), wo, bo.reshape(1, E)]

    kernel = functools.partial(_mmf_kernel, nhead=nhead, n_batch=N,
                               has_qpos=has_qpos, has_pos=has_pos,
                               has_mask=has_mask)
    out2d = pl.pallas_call(
        kernel,
        out_shape=jax.ShapeDtypeStruct((LN, E), tgt.dtype),
    )(*args)
    return out2d.reshape(L, N, E)


def mmf_forward(params, tgt, memory, memory_key_padding_mask=None,
                pos=None, query_pos=None):
    return _mmf_impl(tgt, memory, memory_key_padding_mask, pos, query_pos,
                     params["in_proj_weight"], params["in_proj_bias"],
                     params["out_proj_weight"], params["out_proj_bias"],
                     nhead=params["nhead"])


# ---------------------------------------------------------------------------
# Pure-JAX reference (mirrors torch.nn.MultiheadAttention forward, dropout=0).
# ---------------------------------------------------------------------------
def mmf_reference(params, tgt, memory, memory_key_padding_mask=None,
                  pos=None, query_pos=None):
    L, N, E = tgt.shape
    S = memory.shape[0]
    H = params["nhead"]
    Dh = E // H
    w_in, b_in = params["in_proj_weight"], params["in_proj_bias"]
    wq, wk, wv = w_in[:E], w_in[E:2 * E], w_in[2 * E:]
    bq, bk, bv = b_in[:E], b_in[E:2 * E], b_in[2 * E:]
    q_in = tgt if query_pos is None else tgt + query_pos
    k_in = memory if pos is None else memory + pos
    q = q_in @ wq.T + bq
    k = k_in @ wk.T + bk
    v = memory @ wv.T + bv
    q4 = q.reshape(L, N, H, Dh).transpose(1, 2, 0, 3) / math.sqrt(Dh)
    k4 = k.reshape(S, N, H, Dh).transpose(1, 2, 0, 3)
    v4 = v.reshape(S, N, H, Dh).transpose(1, 2, 0, 3)
    s = jnp.einsum("nhld,nhsd->nhls", q4, k4)
    if memory_key_padding_mask is not None:
        s = s + jnp.where(memory_key_padding_mask, -jnp.inf, 0.0)[:, None, None, :]
    p = jax.nn.softmax(s, axis=-1)
    a = jnp.einsum("nhls,nhsd->nhld", p, v4)
    a = a.transpose(2, 0, 1, 3).reshape(L, N, E)
    tgt2 = a @ params["out_proj_weight"].T + params["out_proj_bias"]
    return tgt * tgt2


if __name__ == "__main__":
    # Small shapes consistent with the module: d_model=32, nhead=4.
    L, S, N, E, H = 8, 16, 2, 32, 4

    key = jax.random.PRNGKey(0)
    ks = jax.random.split(key, 8)

    params = {
        "nhead": H,
        "in_proj_weight": 0.1 * jax.random.normal(ks[0], (3 * E, E), jnp.float32),
        "in_proj_bias": 0.1 * jax.random.normal(ks[1], (3 * E,), jnp.float32),
        "out_proj_weight": 0.1 * jax.random.normal(ks[2], (E, E), jnp.float32),
        "out_proj_bias": 0.1 * jax.random.normal(ks[3], (E,), jnp.float32),
    }

    tgt = jax.random.normal(ks[4], (L, N, E), jnp.float32)
    memory = jax.random.normal(ks[5], (S, N, E), jnp.float32)
    query_pos = jax.random.normal(ks[6], (L, N, E), jnp.float32)
    pos = jax.random.normal(ks[7], (S, N, E), jnp.float32)
    # Mask the last 3 memory positions of batch element 1 (never a fully-masked row).
    memory_key_padding_mask = jnp.zeros((N, S), bool).at[1, -3:].set(True)

    # Full-featured path (mask + pos + query_pos).
    out = mmf_forward(params, tgt, memory, memory_key_padding_mask, pos, query_pos)
    out = jax.block_until_ready(out)
    ref = mmf_reference(params, tgt, memory, memory_key_padding_mask, pos, query_pos)
    assert out.shape == (L, N, E)
    assert out.dtype == tgt.dtype
    assert bool(jnp.allclose(out, ref, atol=2e-2, rtol=2e-2)), "mismatch vs reference"

    # Specialized path (no mask / no positional embeddings): inputs are skipped,
    # not streamed as zeros.
    out2 = mmf_forward(params, tgt, memory)
    out2 = jax.block_until_ready(out2)
    ref2 = mmf_reference(params, tgt, memory)
    assert bool(jnp.allclose(out2, ref2, atol=2e-2, rtol=2e-2)), "mismatch (no-mask path)"

    print("KERNEL_OK")
</pallas_src>

<mosaic_0001>
module attributes {stable_mosaic.version = 11 : i64} {
  func.func @_mmf_kernel(%arg0: memref<16x32xf32, #tpu.memory_space<vmem>>, %arg1: memref<16x32xf32, #tpu.memory_space<vmem>>, %arg2: memref<32x32xf32, #tpu.memory_space<vmem>>, %arg3: memref<32x32xf32, #tpu.memory_space<vmem>>, %arg4: memref<2x16xf32, #tpu.memory_space<vmem>>, %arg5: memref<96x32xf32, #tpu.memory_space<vmem>>, %arg6: memref<1x96xf32, #tpu.memory_space<vmem>>, %arg7: memref<32x32xf32, #tpu.memory_space<vmem>>, %arg8: memref<1x32xf32, #tpu.memory_space<vmem>>, %arg9: memref<16x32xf32, #tpu.memory_space<vmem>>) attributes {dimension_semantics = [], scalar_prefetch = 0 : i64, scratch_operands = 0 : i64, tpu.core_type = #tpu.core_type<tc>} {
    %c0 = arith.constant 0 : index
    %c0_0 = arith.constant 0 : index
    %0 = vector.load %arg0[%c0, %c0_0] : memref<16x32xf32, #tpu.memory_space<vmem>>, vector<16x32xf32>
    %c0_1 = arith.constant 0 : index
    %c0_2 = arith.constant 0 : index
    %1 = vector.load %arg1[%c0_1, %c0_2] : memref<16x32xf32, #tpu.memory_space<vmem>>, vector<16x32xf32>
    %2 = arith.addf %0, %1 : vector<16x32xf32>
    %c0_3 = arith.constant 0 : index
    %c0_4 = arith.constant 0 : index
    %3 = vector.load %arg2[%c0_3, %c0_4] : memref<32x32xf32, #tpu.memory_space<vmem>>, vector<32x32xf32>
    %c0_5 = arith.constant 0 : index
    %c0_6 = arith.constant 0 : index
    %4 = vector.load %arg3[%c0_5, %c0_6] : memref<32x32xf32, #tpu.memory_space<vmem>>, vector<32x32xf32>
    %5 = arith.addf %3, %4 : vector<32x32xf32>
    %c0_7 = arith.constant 0 : index
    %c0_8 = arith.constant 0 : index
    %6 = vector.load %arg5[%c0_7, %c0_8] : memref<96x32xf32, #tpu.memory_space<vmem>>, vector<96x32xf32>
    %c0_9 = arith.constant 0 : index
    %c0_10 = arith.constant 0 : index
    %7 = vector.load %arg6[%c0_9, %c0_10] : memref<1x96xf32, #tpu.memory_space<vmem>>, vector<1x96xf32>
    %8 = vector.extract_strided_slice %6 {offsets = [0, 0], sizes = [32, 32], strides = [1, 1]} : vector<96x32xf32> to vector<32x32xf32>
    %9 = arith.truncf %8 : vector<32x32xf32> to vector<32x32xbf16>
    %10 = vector.extract_strided_slice %7 {offsets = [0, 0], sizes = [1, 32], strides = [1, 1]} : vector<1x96xf32> to vector<1x32xf32>
    %11 = arith.truncf %2 : vector<16x32xf32> to vector<16x32xbf16>
    %cst = arith.constant dense<0.000000e+00> : vector<16x32xf32>
    %12 = tpu.matmul %11, %9, %cst {dimension_numbers = #tpu.dot_dimension_numbers<[1], [1], [0], [0], [0, 0, 1, 0], [], []>} : vector<16x32xbf16>, vector<32x32xbf16>, vector<16x32xf32> -> vector<16x32xf32>
    %13 = vector.broadcast %10 : vector<1x32xf32> to vector<16x32xf32>
    %14 = arith.addf %12, %13 : vector<16x32xf32>
    %cst_11 = arith.constant 0.353553385 : f32
    %15 = vector.broadcast %cst_11 : f32 to vector<16x32xf32>
    %16 = arith.mulf %14, %15 : vector<16x32xf32>
    %17 = vector.extract_strided_slice %6 {offsets = [32, 0], sizes = [32, 32], strides = [1, 1]} : vector<96x32xf32> to vector<32x32xf32>
    %18 = arith.truncf %17 : vector<32x32xf32> to vector<32x32xbf16>
    %19 = vector.extract_strided_slice %7 {offsets = [0, 32], sizes = [1, 32], strides = [1, 1]} : vector<1x96xf32> to vector<1x32xf32>
    %20 = arith.truncf %5 : vector<32x32xf32> to vector<32x32xbf16>
    %cst_12 = arith.constant dense<0.000000e+00> : vector<32x32xf32>
    %21 = tpu.matmul %20, %18, %cst_12 {dimension_numbers = #tpu.dot_dimension_numbers<[1], [1], [0], [0], [0, 0, 1, 0], [], []>} : vector<32x32xbf16>, vector<32x32xbf16>, vector<32x32xf32> -> vector<32x32xf32>
    %22 = vector.broadcast %19 : vector<1x32xf32> to vector<32x32xf32>
    %23 = arith.addf %21, %22 : vector<32x32xf32>
    %24 = vector.extract_strided_slice %6 {offsets = [64, 0], sizes = [32, 32], strides = [1, 1]} : vector<96x32xf32> to vector<32x32xf32>
    %25 = arith.truncf %24 : vector<32x32xf32> to vector<32x32xbf16>
    %26 = vector.extract_strided_slice %7 {offsets = [0, 64], sizes = [1, 32], strides = [1, 1]} : vector<1x96xf32> to vector<1x32xf32>
    %27 = arith.truncf %3 : vector<32x32xf32> to vector<32x32xbf16>
    %cst_13 = arith.constant dense<0.000000e+00> : vector<32x32xf32>
    %28 = tpu.matmul %27, %25, %cst_13 {dimension_numbers = #tpu.dot_dimension_numbers<[1], [1], [0], [0], [0, 0, 1, 0], [], []>} : vector<32x32xbf16>, vector<32x32xbf16>, vector<32x32xf32> -> vector<32x32xf32>
    %29 = vector.broadcast %26 : vector<1x32xf32> to vector<32x32xf32>
    %30 = arith.addf %28, %29 : vector<32x32xf32>
    %31 = arith.truncf %16 : vector<16x32xf32> to vector<16x32xbf16>
    %32 = arith.truncf %23 : vector<32x32xf32> to vector<32x32xbf16>
    %33 = arith.truncf %30 : vector<32x32xf32> to vector<32x32xbf16>
    %34 = tpu.iota {dimensions = array<i32: 0>} : vector<16x32xi32>
    %35 = tpu.iota {dimensions = array<i32: 1>} : vector<16x32xi32>
    %36 = arith.sitofp %34 : vector<16x32xi32> to vector<16x32xf32>
    %cst_14 = arith.constant 5.000000e-01 : f32
    %37 = vector.broadcast %cst_14 : f32 to vector<16x32xf32>
    %38 = arith.addf %36, %37 : vector<16x32xf32>
    %cst_15 = arith.constant 5.000000e-01 : f32
    %39 = vector.broadcast %cst_15 : f32 to vector<16x32xf32>
    %40 = arith.mulf %38, %39 : vector<16x32xf32>
    %41 = math.floor %40 : vector<16x32xf32>
    %cst_16 = arith.constant 2.000000e+00 : f32
    %42 = vector.broadcast %cst_16 : f32 to vector<16x32xf32>
    %43 = arith.mulf %41, %42 : vector<16x32xf32>
    %44 = arith.subf %36, %43 : vector<16x32xf32>
    %45 = arith.sitofp %35 : vector<16x32xi32> to vector<16x32xf32>
    %cst_17 = arith.constant 5.000000e-01 : f32
    %46 = vector.broadcast %cst_17 : f32 to vector<16x32xf32>
    %47 = arith.addf %45, %46 : vector<16x32xf32>
    %cst_18 = arith.constant 5.000000e-01 : f32
    %48 = vector.broadcast %cst_18 : f32 to vector<16x32xf32>
    %49 = arith.mulf %47, %48 : vector<16x32xf32>
    %50 = math.floor %49 : vector<16x32xf32>
    %cst_19 = arith.constant 2.000000e+00 : f32
    %51 = vector.broadcast %cst_19 : f32 to vector<16x32xf32>
    %52 = arith.mulf %50, %51 : vector<16x32xf32>
    %53 = arith.subf %45, %52 : vector<16x32xf32>
    %54 = arith.cmpf oeq, %44, %53 : vector<16x32xf32>
    %cst_20 = arith.constant 0.000000e+00 : f32
    %cst_21 = arith.constant -1.000000e+09 : f32
    %55 = vector.broadcast %cst_20 : f32 to vector<16x32xf32>
    %56 = vector.broadcast %cst_21 : f32 to vector<16x32xf32>
    %57 = arith.select %54, %55, %56 : vector<16x32xi1>, vector<16x32xf32>
    %c0_22 = arith.constant 0 : index
    %c0_23 = arith.constant 0 : index
    %58 = vector.load %arg4[%c0_22, %c0_23] : memref<2x16xf32, #tpu.memory_space<vmem>>, vector<2x16xf32>
    %59 = tpu.iota {dimensions = array<i32: 0>} : vector<16x32xi32>
    %60 = tpu.iota {dimensions = array<i32: 1>} : vector<16x32xi32>
    %c2_i32 = arith.constant 2 : i32
    %61 = vector.broadcast %c2_i32 : i32 to vector<16x32xi32>
    %62 = arith.muli %61, %59 : vector<16x32xi32>
    %63 = arith.subi %60, %62 : vector<16x32xi32>
    %c0_i32 = arith.constant 0 : i32
    %64 = vector.broadcast %c0_i32 : i32 to vector<16x32xi32>
    %65 = arith.cmpi sge, %63, %64 : vector<16x32xi32>
    %c2_i32_24 = arith.constant 2 : i32
    %66 = vector.broadcast %c2_i32_24 : i32 to vector<16x32xi32>
    %67 = arith.cmpi slt, %63, %66 : vector<16x32xi32>
    %68 = arith.andi %65, %67 : vector<16x32xi1>
    %69 = arith.extui %68 : vector<16x32xi1> to vector<16x32xi32>
    %70 = arith.sitofp %69 : vector<16x32xi32> to vector<16x32xf32>
    %cst_25 = arith.constant dense<0.000000e+00> : vector<2x32xf32>
    %71 = tpu.matmul %58, %70, %cst_25 {dimension_numbers = #tpu.dot_dimension_numbers<[1], [0], [0], [1], [0, 0, 1, 1], [], []>} : vector<2x16xf32>, vector<16x32xf32>, vector<2x32xf32> -> vector<2x32xf32>
    %72 = tpu.iota {dimensions = array<i32: 0>} : vector<2x32xi32>
    %73 = tpu.iota {dimensions = array<i32: 1>} : vector<2x32xi32>
    %74 = arith.sitofp %73 : vector<2x32xi32> to vector<2x32xf32>
    %cst_26 = arith.constant 5.000000e-01 : f32
    %75 = vector.broadcast %cst_26 : f32 to vector<2x32xf32>
    %76 = arith.addf %74, %75 : vector<2x32xf32>
    %cst_27 = arith.constant 5.000000e-01 : f32
    %77 = vector.broadcast %cst_27 : f32 to vector<2x32xf32>
    %78 = arith.mulf %76, %77 : vector<2x32xf32>
    %79 = math.floor %78 : vector<2x32xf32>
    %cst_28 = arith.constant 2.000000e+00 : f32
    %80 = vector.broadcast %cst_28 : f32 to vector<2x32xf32>
    %81 = arith.mulf %79, %80 : vector<2x32xf32>
    %82 = arith.subf %74, %81 : vector<2x32xf32>
    %83 = arith.sitofp %72 : vector<2x32xi32> to vector<2x32xf32>
    %84 = arith.cmpf oeq, %82, %83 : vector<2x32xf32>
    %cst_29 = arith.constant 0.000000e+00 : f32
    %85 = vector.broadcast %cst_29 : f32 to vector<2x32xf32>
    %86 = arith.select %84, %71, %85 : vector<2x32xi1>, vector<2x32xf32>
    %cst_30 = arith.constant dense<0.000000e+00> : vector<32xf32>
    %87 = vector.multi_reduction <add>, %86, %cst_30 [0] : vector<2x32xf32> to vector<32xf32>
    %88 = vector.shape_cast %87 : vector<32xf32> to vector<1x32xf32>
    %cst_31 = arith.constant -1.000000e+09 : f32
    %89 = vector.broadcast %cst_31 : f32 to vector<1x32xf32>
    %90 = arith.mulf %88, %89 : vector<1x32xf32>
    %91 = vector.broadcast %90 : vector<1x32xf32> to vector<16x32xf32>
    %92 = arith.addf %57, %91 : vector<16x32xf32>
    %c0_32 = arith.constant 0 : index
    %c0_33 = arith.constant 0 : index
    %93 = vector.load %arg7[%c0_32, %c0_33] : memref<32x32xf32, #tpu.memory_space<vmem>>, vector<32x32xf32>
    %94 = arith.truncf %93 : vector<32x32xf32> to vector<32x32xbf16>
    %cst_34 = arith.constant 0.000000e+00 : f32
    %95 = vector.broadcast %cst_34 : f32 to vector<16x32xf32>
    %96 = vector.extract_strided_slice %31 {offsets = [0, 0], sizes = [16, 8], strides = [1, 1]} : vector<16x32xbf16> to vector<16x8xbf16>
    %97 = vector.extract_strided_slice %32 {offsets = [0, 0], sizes = [32, 8], strides = [1, 1]} : vector<32x32xbf16> to vector<32x8xbf16>
    %cst_35 = arith.constant dense<0.000000e+00> : vector<16x32xf32>
    %98 = tpu.matmul %96, %97, %cst_35 {dimension_numbers = #tpu.dot_dimension_numbers<[1], [1], [0], [0], [0, 0, 1, 0], [], []>} : vector<16x8xbf16>, vector<32x8xbf16>, vector<16x32xf32> -> vector<16x32xf32>
    %99 = arith.addf %98, %92 : vector<16x32xf32>
    %cst_36 = arith.constant dense<0xFF800000> : vector<16xf32>
    %100 = vector.multi_reduction <maximumf>, %99, %cst_36 [1] : vector<16x32xf32> to vector<16xf32>
    %101 = vector.shape_cast %100 : vector<16xf32> to vector<16x1xf32>
    %102 = vector.broadcast %101 : vector<16x1xf32> to vector<16x32xf32>
    %103 = arith.subf %99, %102 : vector<16x32xf32>
    %104 = math.exp %103 : vector<16x32xf32>
    %cst_37 = arith.constant dense<0.000000e+00> : vector<16xf32>
    %105 = vector.multi_reduction <add>, %104, %cst_37 [1] : vector<16x32xf32> to vector<16xf32>
    %106 = vector.shape_cast %105 : vector<16xf32> to vector<16x1xf32>
    %107 = tpu.reciprocal %106 {approx = true} : vector<16x1xf32> -> vector<16x1xf32>
    %108 = vector.broadcast %107 : vector<16x1xf32> to vector<16x32xf32>
    %109 = arith.mulf %104, %108 : vector<16x32xf32>
    %110 = arith.truncf %109 : vector<16x32xf32> to vector<16x32xbf16>
    %111 = vector.extract_strided_slice %33 {offsets = [0, 0], sizes = [32, 8], strides = [1, 1]} : vector<32x32xbf16> to vector<32x8xbf16>
    %cst_38 = arith.constant dense<0.000000e+00> : vector<16x8xf32>
    %112 = tpu.matmul %110, %111, %cst_38 {dimension_numbers = #tpu.dot_dimension_numbers<[1], [0], [0], [1], [0, 0, 1, 1], [], []>} : vector<16x32xbf16>, vector<32x8xbf16>, vector<16x8xf32> -> vector<16x8xf32>
    %113 = arith.truncf %112 : vector<16x8xf32> to vector<16x8xbf16>
    %114 = vector.extract_strided_slice %94 {offsets = [0, 0], sizes = [32, 8], strides = [1, 1]} : vector<32x32xbf16> to vector<32x8xbf16>
    %cst_39 = arith.constant dense<0.000000e+00> : vector<16x32xf32>
    %115 = tpu.matmul %113, %114, %cst_39 {dimension_numbers = #tpu.dot_dimension_numbers<[1], [1], [0], [0], [0, 0, 1, 0], [], []>} : vector<16x8xbf16>, vector<32x8xbf16>, vector<16x32xf32> -> vector<16x32xf32>
    %116 = arith.addf %95, %115 : vector<16x32xf32>
    %117 = vector.extract_strided_slice %31 {offsets = [0, 8], sizes = [16, 8], strides = [1, 1]} : vector<16x32xbf16> to vector<16x8xbf16>
    %118 = vector.extract_strided_slice %32 {offsets = [0, 8], sizes = [32, 8], strides = [1, 1]} : vector<32x32xbf16> to vector<32x8xbf16>
    %cst_40 = arith.constant dense<0.000000e+00> : vector<16x32xf32>
    %119 = tpu.matmul %117, %118, %cst_40 {dimension_numbers = #tpu.dot_dimension_numbers<[1], [1], [0], [0], [0, 0, 1, 0], [], []>} : vector<16x8xbf16>, vector<32x8xbf16>, vector<16x32xf32> -> vector<16x32xf32>
    %120 = arith.addf %119, %92 : vector<16x32xf32>
    %cst_41 = arith.constant dense<0xFF800000> : vector<16xf32>
    %121 = vector.multi_reduction <maximumf>, %120, %cst_41 [1] : vector<16x32xf32> to vector<16xf32>
    %122 = vector.shape_cast %121 : vector<16xf32> to vector<16x1xf32>
    %123 = vector.broadcast %122 : vector<16x1xf32> to vector<16x32xf32>
    %124 = arith.subf %120, %123 : vector<16x32xf32>
    %125 = math.exp %124 : vector<16x32xf32>
    %cst_42 = arith.constant dense<0.000000e+00> : vector<16xf32>
    %126 = vector.multi_reduction <add>, %125, %cst_42 [1] : vector<16x32xf32> to vector<16xf32>
    %127 = vector.shape_cast %126 : vector<16xf32> to vector<16x1xf32>
    %128 = tpu.reciprocal %127 {approx = true} : vector<16x1xf32> -> vector<16x1xf32>
    %129 = vector.broadcast %128 : vector<16x1xf32> to vector<16x32xf32>
    %130 = arith.mulf %125, %129 : vector<16x32xf32>
    %131 = arith.truncf %130 : vector<16x32xf32> to vector<16x32xbf16>
    %132 = vector.extract_strided_slice %33 {offsets = [0, 8], sizes = [32, 8], strides = [1, 1]} : vector<32x32xbf16> to vector<32x8xbf16>
    %cst_43 = arith.constant dense<0.000000e+00> : vector<16x8xf32>
    %133 = tpu.matmul %131, %132, %cst_43 {dimension_numbers = #tpu.dot_dimension_numbers<[1], [0], [0], [1], [0, 0, 1, 1], [], []>} : vector<16x32xbf16>, vector<32x8xbf16>, vector<16x8xf32> -> vector<16x8xf32>
    %134 = arith.truncf %133 : vector<16x8xf32> to vector<16x8xbf16>
    %135 = vector.extract_strided_slice %94 {offsets = [0, 8], sizes = [32, 8], strides = [1, 1]} : vector<32x32xbf16> to vector<32x8xbf16>
    %cst_44 = arith.constant dense<0.000000e+00> : vector<16x32xf32>
    %136 = tpu.matmul %134, %135, %cst_44 {dimension_numbers = #tpu.dot_dimension_numbers<[1], [1], [0], [0], [0, 0, 1, 0], [], []>} : vector<16x8xbf16>, vector<32x8xbf16>, vector<16x32xf32> -> vector<16x32xf32>
    %137 = arith.addf %116, %136 : vector<16x32xf32>
    %138 = vector.extract_strided_slice %31 {offsets = [0, 16], sizes = [16, 8], strides = [1, 1]} : vector<16x32xbf16> to vector<16x8xbf16>
    %139 = vector.extract_strided_slice %32 {offsets = [0, 16], sizes = [32, 8], strides = [1, 1]} : vector<32x32xbf16> to vector<32x8xbf16>
    %cst_45 = arith.constant dense<0.000000e+00> : vector<16x32xf32>
    %140 = tpu.matmul %138, %139, %cst_45 {dimension_numbers = #tpu.dot_dimension_numbers<[1], [1], [0], [0], [0, 0, 1, 0], [], []>} : vector<16x8xbf16>, vector<32x8xbf16>, vector<16x32xf32> -> vector<16x32xf32>
    %141 = arith.addf %140, %92 : vector<16x32xf32>
    %cst_46 = arith.constant dense<0xFF800000> : vector<16xf32>
    %142 = vector.multi_reduction <maximumf>, %141, %cst_46 [1] : vector<16x32xf32> to vector<16xf32>
    %143 = vector.shape_cast %142 : vector<16xf32> to vector<16x1xf32>
    %144 = vector.broadcast %143 : vector<16x1xf32> to vector<16x32xf32>
    %145 = arith.subf %141, %144 : vector<16x32xf32>
    %146 = math.exp %145 : vector<16x32xf32>
    %cst_47 = arith.constant dense<0.000000e+00> : vector<16xf32>
    %147 = vector.multi_reduction <add>, %146, %cst_47 [1] : vector<16x32xf32> to vector<16xf32>
    %148 = vector.shape_cast %147 : vector<16xf32> to vector<16x1xf32>
    %149 = tpu.reciprocal %148 {approx = true} : vector<16x1xf32> -> vector<16x1xf32>
    %150 = vector.broadcast %149 : vector<16x1xf32> to vector<16x32xf32>
    %151 = arith.mulf %146, %150 : vector<16x32xf32>
    %152 = arith.truncf %151 : vector<16x32xf32> to vector<16x32xbf16>
    %153 = vector.extract_strided_slice %33 {offsets = [0, 16], sizes = [32, 8], strides = [1, 1]} : vector<32x32xbf16> to vector<32x8xbf16>
    %cst_48 = arith.constant dense<0.000000e+00> : vector<16x8xf32>
    %154 = tpu.matmul %152, %153, %cst_48 {dimension_numbers = #tpu.dot_dimension_numbers<[1], [0], [0], [1], [0, 0, 1, 1], [], []>} : vector<16x32xbf16>, vector<32x8xbf16>, vector<16x8xf32> -> vector<16x8xf32>
    %155 = arith.truncf %154 : vector<16x8xf32> to vector<16x8xbf16>
    %156 = vector.extract_strided_slice %94 {offsets = [0, 16], sizes = [32, 8], strides = [1, 1]} : vector<32x32xbf16> to vector<32x8xbf16>
    %cst_49 = arith.constant dense<0.000000e+00> : vector<16x32xf32>
    %157 = tpu.matmul %155, %156, %cst_49 {dimension_numbers = #tpu.dot_dimension_numbers<[1], [1], [0], [0], [0, 0, 1, 0], [], []>} : vector<16x8xbf16>, vector<32x8xbf16>, vector<16x32xf32> -> vector<16x32xf32>
    %158 = arith.addf %137, %157 : vector<16x32xf32>
    %159 = vector.extract_strided_slice %31 {offsets = [0, 24], sizes = [16, 8], strides = [1, 1]} : vector<16x32xbf16> to vector<16x8xbf16>
    %160 = vector.extract_strided_slice %32 {offsets = [0, 24], sizes = [32, 8], strides = [1, 1]} : vector<32x32xbf16> to vector<32x8xbf16>
    %cst_50 = arith.constant dense<0.000000e+00> : vector<16x32xf32>
    %161 = tpu.matmul %159, %160, %cst_50 {dimension_numbers = #tpu.dot_dimension_numbers<[1], [1], [0], [0], [0, 0, 1, 0], [], []>} : vector<16x8xbf16>, vector<32x8xbf16>, vector<16x32xf32> -> vector<16x32xf32>
    %162 = arith.addf %161, %92 : vector<16x32xf32>
    %cst_51 = arith.constant dense<0xFF800000> : vector<16xf32>
    %163 = vector.multi_reduction <maximumf>, %162, %cst_51 [1] : vector<16x32xf32> to vector<16xf32>
    %164 = vector.shape_cast %163 : vector<16xf32> to vector<16x1xf32>
    %165 = vector.broadcast %164 : vector<16x1xf32> to vector<16x32xf32>
    %166 = arith.subf %162, %165 : vector<16x32xf32>
    %167 = math.exp %166 : vector<16x32xf32>
    %cst_52 = arith.constant dense<0.000000e+00> : vector<16xf32>
    %168 = vector.multi_reduction <add>, %167, %cst_52 [1] : vector<16x32xf32> to vector<16xf32>
    %169 = vector.shape_cast %168 : vector<16xf32> to vector<16x1xf32>
    %170 = tpu.reciprocal %169 {approx = true} : vector<16x1xf32> -> vector<16x1xf32>
    %171 = vector.broadcast %170 : vector<16x1xf32> to vector<16x32xf32>
    %172 = arith.mulf %167, %171 : vector<16x32xf32>
    %173 = arith.truncf %172 : vector<16x32xf32> to vector<16x32xbf16>
    %174 = vector.extract_strided_slice %33 {offsets = [0, 24], sizes = [32, 8], strides = [1, 1]} : vector<32x32xbf16> to vector<32x8xbf16>
    %cst_53 = arith.constant dense<0.000000e+00> : vector<16x8xf32>
    %175 = tpu.matmul %173, %174, %cst_53 {dimension_numbers = #tpu.dot_dimension_numbers<[1], [0], [0], [1], [0, 0, 1, 1], [], []>} : vector<16x32xbf16>, vector<32x8xbf16>, vector<16x8xf32> -> vector<16x8xf32>
    %176 = arith.truncf %175 : vector<16x8xf32> to vector<16x8xbf16>
    %177 = vector.extract_strided_slice %94 {offsets = [0, 24], sizes = [32, 8], strides = [1, 1]} : vector<32x32xbf16> to vector<32x8xbf16>
    %cst_54 = arith.constant dense<0.000000e+00> : vector<16x32xf32>
    %178 = tpu.matmul %176, %177, %cst_54 {dimension_numbers = #tpu.dot_dimension_numbers<[1], [1], [0], [0], [0, 0, 1, 0], [], []>} : vector<16x8xbf16>, vector<32x8xbf16>, vector<16x32xf32> -> vector<16x32xf32>
    %179 = arith.addf %158, %178 : vector<16x32xf32>
    %c0_55 = arith.constant 0 : index
    %c0_56 = arith.constant 0 : index
    %180 = vector.load %arg8[%c0_55, %c0_56] : memref<1x32xf32, #tpu.memory_space<vmem>>, vector<1x32xf32>
    %181 = vector.broadcast %180 : vector<1x32xf32> to vector<16x32xf32>
    %182 = arith.addf %179, %181 : vector<16x32xf32>
    %183 = arith.mulf %0, %182 : vector<16x32xf32>
    %c0_57 = arith.constant 0 : index
    %c0_58 = arith.constant 0 : index
    %184 = vector.load %arg9[%c0_57, %c0_58] : memref<16x32xf32, #tpu.memory_space<vmem>>, vector<16x32xf32>
    tpu.vector_store %arg9[%c0_57, %c0_58], %183 {strides = array<i32>} : memref<16x32xf32, #tpu.memory_space<vmem>>, vector<16x32xf32>,
    return
  }
}

</mosaic_0001>

<bundles_post_ra>
// kernel: _mmf_impl.1
= control target key start
LH: loop header
LB: loop body
LE: loop exit
PB: predicated region body
PF: predicated region fallthrough
CT: control target
= control target key end

     0   :  { %vm74_vm0 = vcmask 261120   ;;  %v268_v3 = vlaneseq  ;;  %v1441_v6 = vmov 0.0   ;;  %vm1442_vm1 = vmmov 0   ;;  %s1443_s17 = smov 96   ;;  %s1852_s0 = inlined_call_operand.vmem [shape: f32[16,32], index: 0, kind: input, shape index: {}]   ;;  %s1853_s1 = inlined_call_operand.vmem [shape: f32[16,32], index: 1, kind: input, shape index: {}]   ;;  %s1854_s2 = inlined_call_operand.vmem [shape: f32[32,32], index: 2, kind: input, shape index: {}]   ;;  %s1855_s3 = inlined_call_operand.vmem [shape: f32[32,32], index: 3, kind: input, shape index: {}]   ;;  %s1856_s4 = inlined_call_operand.vmem [shape: f32[2,16], index: 4, kind: input, shape index: {}]   ;;  %s1857_s5 = inlined_call_operand.vmem [shape: f32[96,32], index: 5, kind: input, shape index: {}]   ;;  %s1858_s6 = inlined_call_operand.vmem [shape: f32[1,96], index: 6, kind: input, shape index: {}]   ;;  %s1859_s7 = inlined_call_operand.vmem [shape: f32[32,32], index: 7, kind: input, shape index: {}]   ;;  %s1860_s8 = inlined_call_operand.vmem [shape: f32[1,32], index: 8, kind: input, shape index: {}]   ;;  %s1861_s9 = inlined_call_operand.hbm [shape: f32[16,32], index: 9, kind: output, shape index: {}]  }
   0x1   :  { %v56_v0 = vld [vmem:[%s1857_s5 + $0x20] sm:$0xff]  ;;  %v57_v1 = vld [vmem:[%s1857_s5 + $0x28] sm:$0xff]  ;;  %v58_v2 = vld [vmem:[%s1857_s5 + $0x30] sm:$0xff]  ;;  %1238 = vmatprep.subr.bf16.mxu0 %v1441_v6  ;;  %1242 = vmatprep.mubr.msk.bf16.mxu0 %vm1442_vm1, %v1441_v6 }
   0x2   :  { %v127_v4 = vpack.c.bf16 %v57_v1, %v56_v0  ;;  %v59_v5 = vld [vmem:[%s1857_s5 + $0x38] sm:$0xff]  ;;  %v52_v7 = vld [vmem:[%s1857_s5] sm:$0xff]  ;;  %v53_v8 = vld [vmem:[%s1857_s5 + $0x8] sm:$0xff]  ;;  %v1538_v14 = vshrl.u32 %v268_v3, 7  ;;  %v1563_v24 = vand.u32 127, %v268_v3 }
   0x3   :  { %v128_v9 = vpack.c.bf16 %v59_v5, %v58_v2  ;;  %v65_v10 = vpack.c.bf16 %v53_v8, %v52_v7  ;;  %v1528_v11 = vld [vmem:[%s1854_s2] sm:$0xff]  ;;  %v1533_v12 = vld [vmem:[%s1854_s2 + $0x8] sm:$0xff]  ;;  %v1549_v18 = vld [vmem:[%s1854_s2 + $0x10] sm:$0xff] }
   0x4   :  { %v44_v13 = vld [vmem:[%s1855_s3] sm:$0xff]  ;;  %1368 = vmatprep.subr.msk.bf16.mxu1 %vm74_vm0, %v127_v4  ;;  %v141_v15 = vsel %vm74_vm0, %v127_v4, 0  ;;  %v45_v16 = vld [vmem:[%s1855_s3 + $0x8] sm:$0xff]  ;;  %v1554_v19 = vld [vmem:[%s1854_s2 + $0x18] sm:$0xff]  ;;  %v1570_v26 = vadd.s32 8, %v1538_v14  ;;  %v296_v27 = vmul.u32 2, %v1538_v14 }
   0x5   :  { %v48_v17 = vadd.f32 %v44_v13, %v1528_v11  ;;  %1247 = vmatpush3.bf16.xpose.msra.mxu1 %v141_v15  ;;  %v79_v20 = vsel %vm74_vm0, %v65_v10, 0  ;;  %v49_v21 = vadd.f32 %v45_v16, %v1533_v12  ;;  %v198_v22 = vpack.c.bf16 %v1554_v19, %v1549_v18  ;;  %v54_v23 = vld [vmem:[%s1857_s5 + $0x10] sm:$0xff]  ;;  %v55_v25 = vld [vmem:[%s1857_s5 + $0x18] sm:$0xff]  ;;  %v1577_v30 = vld [vmem:[%s1858_s6] ss:$0 sm:$0xff] }
   0x6   :  { %1369 = vmatprep.subr.msk.bf16.mxu1 %vm74_vm0, %v128_v9  ;;  %1239 = vmatpush3.bf16.xpose.msra.mxu0 %v79_v20  ;;  %v66_v29 = vpack.c.bf16 %v55_v25, %v54_v23  ;;  %v297_v31 = vmul.u32 2, %v1570_v26 }
   0x7   :  { %v129_v28 = vpack.c.bf16 %v49_v21, %v48_v17  ;;  %1240 = vmatprep.subr.bf16.mxu0 %v1441_v6  ;;  %131 = vrot.lane.b32.xlu0 %v1577_v30, %s1443_s17 }
   0x8   :  { %14 = vsyncpa [#allocation3], 0  ;;  %v46_v32 = vld [vmem:[%s1855_s3 + $0x10] sm:$0xff]  ;;  %v47_v33 = vld [vmem:[%s1855_s3 + $0x18] sm:$0xff]  ;;  %v298_v35 = vsub.s32 %v1563_v24, %v296_v27  ;;  %v144_v36 = vsel %vm74_vm0, %v128_v9, 0  ;;  %v299_v40 = vsub.s32 %v1563_v24, %v297_v31  ;;  %v82_v41 = vsel %vm74_vm0, %v66_v29, 0 }
   0x9   :  { %1250 = vmatprep.mubr.msk.bf16.mxu1 %vm74_vm0, %v129_v28  ;;  %v1591_v34 = vld [vmem:[%s1852_s0] sm:$0xff]  ;;  %v1598_v37 = vld [vmem:[%s1852_s0 + $0x8] sm:$0xff]  ;;  %v50_v42 = vadd.f32 %v46_v32, %v1549_v18  ;;  %v51_v43 = vadd.f32 %v47_v33, %v1554_v19  ;;  %v1444_v46 = vmov 0.0|0.0   ;;  %v197_v49 = vpack.c.bf16 %v1533_v12, %v1528_v11  ;;  %v62_v20 = vld [vmem:[%s1857_s5 + $0x50] sm:$0xff]  ;;  %s1448_s14 = smov 120   ;;  %s1450_s22 = smov 104  }
   0xa   :  { %v36_v38 = vld [vmem:[%s1853_s1] sm:$0xff]  ;;  %v37_v39 = vld [vmem:[%s1853_s1 + $0x8] sm:$0xff]  ;;  %vm300_vm2 = vcmp.ge.s32.totalorder %v298_v35, 0  ;;  %vm302_vm3 = vcmp.lt.s32.totalorder %v298_v35, 2  ;;  %vm301_vm4 = vcmp.ge.s32.totalorder %v299_v40, 0  ;;  %vm303_vm5 = vcmp.lt.s32.totalorder %v299_v40, 2 }
   0xb   :  { %v38_v44 = vadd.f32 %v36_v38, %v1591_v34  ;;  %v39_v45 = vadd.f32 %v37_v39, %v1598_v37  ;;  %vm304_vm6 = vmand %vm300_vm2, %vm302_vm3  ;;  %v130_v47 = vpack.c.bf16 %v51_v43, %v50_v42  ;;  %v1445_v50 = vmov 1.0|1.0   ;;  %v295_v51 = vld [vmem:[%s1856_s4] sm:$0x3]  ;;  %v61_v15 = vld [vmem:[%s1857_s5 + $0x48] sm:$0xff]  ;;  %s1451_s24 = smov [#allocation2]  }
   0xc   :  { %vm305_vm7 = vmand %vm301_vm4, %vm303_vm5  ;;  %vm310_vm9 = vcmask 130048   ;;  %vm403_vm10 = vcmask 64512   ;;  %v60_v13 = vld [vmem:[%s1857_s5 + $0x40] sm:$0xff]  ;;  %v63_v21 = vld [vmem:[%s1857_s5 + $0x58] sm:$0xff]  ;;  %v285_v27 = vcvt.s32.f32 %v1563_v24  ;;  %v273_v33 = vcvt.s32.f32 %v1538_v14  ;;  %s1447_s5 = smov 64   ;;  %s1153_s25 = sshll.u32 %s1451_s24, 4  ;;  %s1154_s25 = int_to_ptr.vmem [resolvable:$true] %s1153_s25 }
   0xd   :  { %1249 = vmatpush3.bf16.xpose.msra.mxu1 %v144_v36  ;;  %v67_v48 = vpack.c.bf16 %v39_v45, %v38_v44  ;;  %vm1366_vm8 = vmpackc.low %vm305_vm7, %vm304_vm6  ;;  %v195_v16 = vpack.c.bf16 %v61_v15, %v60_v13  ;;  %v196_v23 = vpack.c.bf16 %v63_v21, %v62_v20  ;;  %vm386_vm12 = vcmask 254976   ;;  %s1417_s26 = scalar_lea.vmem %s1154_s25, 256  ;;  %p1422_p1 = scmp.lt.s32.totalorder %s1154_s25, %s1154_s25 }
   0xe   :  { %1241 = vmatpush3.bf16.xpose.msra.mxu0 %v82_v41  ;;  %1365 = vmatprep.subr.bf16.mxu1 %v1444_v46  ;;  %v286_v28 = vadd.f32 0.5, %v285_v27  ;;  %v274_v18 = vcvt.s32.f32 %v1570_v26  ;;  %v275_v19 = vadd.f32 0.5, %v273_v33  ;;  %p1418_p0 = scmp.ne.s32.totalorder %s1154_s25, %s1417_s26  ;;  %p1423_p2 = scmp.lt.s32.totalorder %s1417_s26, %s1417_s26 }
   0xf   :  { %1370 = vmatprep.subr.msk.bf16.mxu0 %vm74_vm0, %v195_v16  ;;  %v209_v17 = vsel %vm74_vm0, %v195_v16, 0  ;;  %v212_v25 = vsel %vm74_vm0, %v196_v23, 0 }
  0x10   :  { %v287_v29 = vmul.f32 0.5, %v286_v28  ;;  %v276_v40 = vadd.f32 0.5, %v274_v18  ;;  %v277_v41 = vmul.f32 0.5, %v275_v19  ;;  %p1424_p3 = por %p1423_p2, %p1422_p1 }
  0x12   :  { %v288_v31 = vfloor.f32 %v287_v29  ;;  %v278_v24 = vmul.f32 0.5, %v276_v40  ;;  %v279_v43 = vfloor.f32 %v277_v41  ;;  %v397_v40 = vld [vmem:[%s1859_s7] sm:$0xff]  ;;  %v398_v41 = vld [vmem:[%s1859_s7 + $0x8] sm:$0xff]  ;;  %p1425_p4 = pnand %p1424_p3, %p1418_p0 }
  0x14   :  { %1251 = vmatmul.mubr.msk.bf16.vlgmr.msra.gmra.mrb[0].mxu1 %vm74_vm0, %v130_v47  ;;  %v289_v32 = vmul.f32 2.0, %v288_v31  ;;  %v280_v45 = vfloor.f32 %v278_v24  ;;  %v281_v46 = vmul.f32 2.0, %v279_v43  ;;  %v1707_v24 = vpack.c.bf16 %v398_v41, %v397_v40 }
  0x15   :  { %1243 = vmatmul.mubr.msk.bf16.vlgmr.msra.gmra.mrb[0].mxu0 %vm74_vm0, %v67_v48  ;;  %1367 = vmatpush3.bf16.msk.msra.mxu1 %vm1366_vm8, %v1445_v50 }
  0x16   :  { %1266 = vmatprep.mubr.msk.f32.mxu1 %vm1442_vm1, %v1441_v6  ;;  %1269 = vmatprep.subr.bf16.mxu1 %v1441_v6  ;;  %v290_v35 = vsub.f32 %v285_v27, %v289_v32  ;;  %v282_v14 = vmul.f32 2.0, %v280_v45  ;;  %v283_v48 = vsub.f32 %v273_v33, %v281_v46  ;;  %v717_v43 = vsel %vm403_vm10, %v1707_v24, 0  ;;  %v399_v45 = vld [vmem:[%s1859_s7 + $0x10] sm:$0xff]  ;;  %v400_v46 = vld [vmem:[%s1859_s7 + $0x18] sm:$0xff]  ;;  %s1449_s7 = smov 112  }
  0x17   :  { %1258 = vmatprep.mubr.msk.bf16.mxu0 %vm74_vm0, %v197_v49  ;;  %1255 = vmatpush3.bf16.xpose.msra.mxu0 %v209_v17 }
  0x18   :  { %1371 = vmatprep.subr.msk.bf16.mxu0 %vm74_vm0, %v196_v23  ;;  %vm384_vm11 = vcmp.eq.f32.partialorder %v290_v35, %v273_v33  ;;  %v284_v50 = vsub.f32 %v274_v18, %v282_v14  ;;  %vm291_vm13 = vcmp.eq.f32.partialorder %v283_v48, %v290_v35 }
  0x1a   :  { %vm292_vm14 = vcmp.eq.f32.partialorder %v284_v50, %v290_v35 }
  0x1c   :  { %1267 = vmatmul.mubr.msk.f32.vlgmr.msra.gmra.mrb[4].mxu1 %vm310_vm9, %v295_v51 }
  0x1d   :  { %1273 = vmatprep.mubr.msk.bf16.mxu1 %vm1442_vm1, %v1441_v6 }
  0x1f   :  { %1257 = vmatpush3.bf16.xpose.msra.mxu0 %v212_v25 }
  0x20   :  { %1277 = vmatprep.subr.bf16.mxu0 %v1441_v6 }
  0x26   :  { %1259 = vmatmul.mubr.msk.bf16.vlgmr.msra.gmra.mrb[4].mxu0 %vm74_vm0, %v198_v22 }
  0x27   :  { %1281 = vmatprep.mubr.msk.bf16.mxu0 %vm1442_vm1, %v1441_v6 }
  0x79   :  { %v132_v52 = vpop.permute.xlu0 %131 }
  0xe7   :  { %v1252_v53 = vpop.f32.mrb[0].mxu1 }
  0xe8   :  { %v180_v54 = vpop.f32.mrb[1].mxu1  ;;  %v118_v55 = vpop.f32.mrb[0].mxu0  ;;  %v189_v59 = vadd.f32 %v1252_v53, %v132_v52 }
  0xe9   :  { %v1253_v56 = vpop.f32.mrb[2].mxu1  ;;  %v119_v57 = vadd.f32 %v1577_v30, %v118_v55  ;;  %v1244_v58 = vpop.f32.mrb[1].mxu0  ;;  %v181_v63 = vadd.f32 %v180_v54, %v132_v52 }
  0xea   :  { %v192_v60 = vadd.f32 %v1253_v56, %v132_v52  ;;  %v183_v61 = vpop.f32.mrb[3].mxu1  ;;  %v121_v62 = vpop.f32.mrb[2].mxu0 }
  0xeb   :  { %v184_v0 = vadd.f32 %v183_v61, %v132_v52  ;;  %v125_v1 = vmul.f32 0.35355338, %v119_v57  ;;  %v122_v2 = vadd.f32 %v1577_v30, %v121_v62  ;;  %v1245_v3 = vpop.f32.mrb[3].mxu0  ;;  %v1446_v52 = vmov -1e+09  }
  0xec   :  { %v1627_v4 = vpack.c.bf16 %v192_v60, %v189_v59  ;;  %v293_v26 = vsel %vm291_vm13, 0.0, %v1446_v52  ;;  %v294_v53 = vsel %vm292_vm14, 0.0, %v1446_v52 }
  0xed   :  { %v1629_v5 = vpack.c.bf16 %v184_v0, %v181_v63  ;;  %v126_v7 = vmul.f32 0.35355338, %v122_v2 }
  0xee   :  { %v411_v10 = vsel %vm403_vm10, %v1627_v4, 0 }
  0xef   :  { %v408_v8 = vsel %vm403_vm10, %v1629_v5, 0  ;;  %v1633_v9 = vpack.c.bf16 %v126_v7, %v125_v1  ;;  %v380_v11 = vpop.f32.mrb[4].mxu1 }
  0xf0   :  { %1270 = vmatpush3.bf16.xpose.msra.mxu1 %v408_v8  ;;  %v1268_v12 = vpop.f32.mrb[5].mxu1  ;;  %v385_v36 = vsel %vm384_vm11, %v380_v11, 0.0 }
  0xf1   :  { %1271 = vmatprep.subr.bf16.mxu1 %v1441_v6  ;;  %v387_v38 = vsel %vm386_vm12, %v385_v36, 0.0 }
  0xf2   :  { %v388_v39 = vrot.slane %v387_v38, 4 }
  0xf4   :  { %v389_v22 = vadd.f32 %v388_v39, %v387_v38 }
  0xf6   :  { %v390_v42 = vrot.slane %v389_v22, 2 }
  0xf8   :  { %1272 = vmatpush3.bf16.xpose.msra.mxu1 %v411_v10  ;;  %v391_v44 = vadd.f32 %v390_v42, %v389_v22 }
  0xf9   :  { %1293 = vmatprep.subr.bf16.mxu1 %v1441_v6  ;;  %v1260_v0 = vpop.f32.mrb[4].mxu0 }
  0xfa   :  { %v392_v47 = vrot.slane %v391_v44, 1  ;;  %v248_v1 = vpop.f32.mrb[5].mxu0 }
  0xfb   :  { %v1261_v2 = vpop.f32.mrb[6].mxu0 }
  0xfc   :  { %v393_v49 = vadd.f32 %v392_v47, %v391_v44  ;;  %v251_v3 = vpop.f32.mrb[7].mxu0  ;;  %v1721_v47 = vpack.c.bf16 %v400_v46, %v399_v45 }
  0xfe   :  { %v394_v51 = vmul.f32 -1e+09, %v393_v49  ;;  %v720_v14 = vsel %vm403_vm10, %v1721_v47, 0 }
  0xff   :  { %1274 = vmatmul.mubr.msk.bf16.vlgmr.msra.gmra.mrb[8].mxu1 %vm403_vm10, %v1633_v9 }
 0x100   :  { %1297 = vmatprep.mubr.msk.bf16.mxu1 %vm1442_vm1, %v1441_v6  ;;  %v1669_v54 = vadd.f32 %v394_v51, %v293_v26  ;;  %v1672_v58 = vadd.f32 %v394_v51, %v294_v53 }
 0x1d2   :  { %v447_v55 = vpop.f32.mrb[8].mxu1 }
 0x1d3   :  { %v448_v56 = vadd.f32 %v447_v55, %v1669_v54  ;;  %v1275_v57 = vpop.f32.mrb[9].mxu1 }
 0x1d4   :  { %v450_v59 = vpop.f32.mrb[10].mxu1 }
 0x1d5   :  { %v451_v60 = vadd.f32 %v450_v59, %v1672_v58  ;;  %v1276_v61 = vpop.f32.mrb[11].mxu1  ;;  %v454_v62 = vsel %vm74_vm0, %v448_v56, -inf }
 0x1d6   :  { %455 = vmax.xlane.f32.xlu0 %v454_v62 }
 0x1d7   :  { %v457_v63 = vsel %vm74_vm0, %v451_v60, -inf }
 0x1d8   :  { %458 = vmax.xlane.f32.xlu1 %v457_v63 }
 0x1e9   :  { %199 = vrot.lane.b32.xlu1 %v1577_v30, %s1447_s5 }
 0x1ec   :  { %523 = vrot.lane.b32.xlu0 %v1633_v9, %s1448_s14 }
 0x1ed   :  { %527 = vrot.lane.b32.xlu1 %v1629_v5, %s1448_s14 }
 0x263   :  { %v456_v7 = vpop.xlane.xlu0 %455 }
 0x264   :  { %v460_v8 = vsub.f32 %v448_v56, %v456_v7 }
 0x265   :  { %v459_v10 = vpop.xlane.xlu1 %458 }
 0x266   :  { %v462_v11 = vmul.f32 1.442695, %v460_v8  ;;  %v461_v12 = vsub.f32 %v451_v60, %v459_v10 }
 0x267   :  { %v524_v44 = vpop.permute.xlu0 %523 }
 0x268   :  { %1385 = vpow2.f32 %v462_v11  ;;  %v464_v13 = vmul.f32 1.442695, %v461_v12 }
 0x269   :  { %v200_v15 = vpop.permute.xlu1 %199 }
 0x26a   :  { %1387 = vpow2.f32 %v464_v13  ;;  %v257_v30 = vadd.f32 %v1260_v0, %v200_v15  ;;  %v249_v16 = vadd.f32 %v248_v1, %v200_v15  ;;  %v260_v17 = vadd.f32 %v1261_v2, %v200_v15 }
 0x26b   :  { %v252_v20 = vadd.f32 %v251_v3, %v200_v15 }
 0x26c   :  { %v1682_v21 = vpack.c.bf16 %v260_v17, %v257_v30 }
 0x26d   :  { %v1684_v23 = vpack.c.bf16 %v252_v20, %v249_v16  ;;  %v528_v31 = vpop.permute.xlu1 %527 }
 0x26e   :  { %v535_v19 = vsel %vm403_vm10, %v528_v31, 0 }
 0x26f   :  { %1278 = vmatpush3.bf16.msra.mxu0 %v1684_v23 }
 0x270   :  { %1279 = vmatprep.subr.bf16.mxu0 %v1441_v6 }
 0x272   :  { %v1386_v25 = vpop.eup %1385 }
 0x273   :  { %v466_v27 = vsel %vm74_vm0, %v1386_v25, 0.0  ;;  %1280 = vmatpush3.bf16.msra.mxu0 %v1682_v21 }
 0x274   :  { %v1388_v28 = vpop.eup %1387  ;;  %467 = vadd.xlane.f32.xlu1 %v466_v27  ;;  %1285 = vmatprep.subr.bf16.mxu0 %v1441_v6 }
 0x275   :  { %v469_v29 = vsel %vm74_vm0, %v1388_v28, 0.0 }
 0x278   :  { %470 = vadd.xlane.f32.xlu1 %v469_v29 }
 0x289   :  { %529 = vrot.lane.b32.xlu1 %v1627_v4, %s1448_s14 }
 0x301   :  { %v468_v32 = vpop.xlane.xlu1 %467 }
 0x302   :  { %1389 = vrcp.f32 %v468_v32 }
 0x305   :  { %v471_v33 = vpop.xlane.xlu1 %470 }
 0x306   :  { %1391 = vrcp.f32 %v471_v33 }
 0x309   :  { %v530_v22 = vpop.permute.xlu1 %529 }
 0x30a   :  { %v538_v42 = vsel %vm403_vm10, %v530_v22, 0 }
 0x30c   :  { %v1390_v35 = vpop.eup %1389 }
 0x30d   :  { %v474_v38 = vmul.f32 %v1390_v35, %v1386_v25 }
 0x310   :  { %v1392_v36 = vpop.eup %1391 }
 0x311   :  { %v475_v39 = vmul.f32 %v1392_v36, %v1388_v28 }
 0x313   :  { %v476_v18 = vpack.c.bf16 %v475_v39, %v474_v38 }
 0x315   :  { %1282 = vmatmul.mubr.msk.bf16.vlgmr.msra.gmra.mrb[8].mxu0 %vm74_vm0, %v476_v18 }
 0x316   :  { %1286 = vmatpush3.bf16.xpose.msra.mxu0 %v535_v19  ;;  %1289 = vmatprep.mubr.msk.bf16.mxu0 %vm1442_vm1, %v1441_v6 }
 0x317   :  { %1287 = vmatprep.subr.bf16.mxu0 %v1441_v6 }
 0x31e   :  { %1288 = vmatpush3.bf16.xpose.msra.mxu0 %v538_v42 }
 0x31f   :  { %1309 = vmatprep.subr.bf16.mxu0 %v1441_v6 }
 0x325   :  { %1290 = vmatmul.mubr.msk.bf16.vlgmr.msra.gmra.mrb[12].mxu0 %vm403_vm10, %v524_v44 }
 0x326   :  { %1310 = vmatpush3.bf16.xpose.msra.mxu0 %v717_v43  ;;  %1313 = vmatprep.mubr.msk.bf16.mxu0 %vm1442_vm1, %v1441_v6 }
 0x327   :  { %1311 = vmatprep.subr.bf16.mxu0 %v1441_v6 }
 0x32e   :  { %1312 = vmatpush3.bf16.xpose.msra.mxu0 %v720_v14 }
 0x32f   :  { %1325 = vmatprep.subr.bf16.mxu0 %v1441_v6 }
 0x3e8   :  { %v514_v48 = vpop.f32.mrb[8].mxu0 }
 0x3e9   :  { %v1283_v49 = vpop.f32.mrb[9].mxu0 }
 0x3ea   :  { %v517_v50 = vpop.f32.mrb[10].mxu0 }
 0x3eb   :  { %v521_v51 = vpack.c.bf16 %v517_v50, %v514_v48  ;;  %v1284_v52 = vpop.f32.mrb[11].mxu0 }
 0x3ed   :  { %1314 = vmatmul.mubr.msk.bf16.vlgmr.msra.gmra.mrb[16].mxu0 %vm403_vm10, %v521_v51 }
 0x3ee   :  { %1329 = vmatprep.mubr.msk.bf16.mxu0 %vm1442_vm1, %v1441_v6 }
 0x3f8   :  { %v574_v26 = vpop.f32.mrb[12].mxu0 }
 0x3f9   :  { %v575_v53 = vadd.f32 %v574_v26, %v1669_v54  ;;  %v1291_v55 = vpop.f32.mrb[13].mxu0 }
 0x3fa   :  { %v577_v56 = vpop.f32.mrb[14].mxu0 }
 0x3fb   :  { %v578_v57 = vadd.f32 %v577_v56, %v1672_v58  ;;  %v1292_v59 = vpop.f32.mrb[15].mxu0  ;;  %v581_v60 = vsel %vm74_vm0, %v575_v53, -inf }
 0x3fc   :  { %582 = vmax.xlane.f32.xlu1 %v581_v60 }
 0x3fd   :  { %v584_v61 = vsel %vm74_vm0, %v578_v57, -inf }
 0x3fe   :  { %585 = vmax.xlane.f32.xlu0 %v584_v61 }
 0x414   :  { %608 = vrot.lane.b32.xlu0 %v1682_v21, %s1448_s14 }
 0x418   :  { %767 = vrot.lane.b32.xlu0 %v1627_v4, %s1449_s7 }
 0x41c   :  { %951 = vrot.lane.b32.xlu0 %v1629_v5, %s1450_s22 }
 0x420   :  { %949 = vrot.lane.b32.xlu0 %v1633_v9, %s1450_s22 }
 0x489   :  { %v583_v62 = vpop.xlane.xlu1 %582 }
 0x48a   :  { %v587_v63 = vsub.f32 %v575_v53, %v583_v62 }
 0x48b   :  { %v586_v0 = vpop.xlane.xlu0 %585 }
 0x48c   :  { %v589_v1 = vmul.f32 1.442695, %v587_v63  ;;  %v588_v2 = vsub.f32 %v578_v57, %v586_v0 }
 0x48e   :  { %1393 = vpow2.f32 %v589_v1  ;;  %v591_v3 = vmul.f32 1.442695, %v588_v2 }
 0x48f   :  { %v609_v25 = vpop.permute.xlu0 %608 }
 0x490   :  { %1395 = vpow2.f32 %v591_v3 }
 0x493   :  { %v768_v40 = vpop.permute.xlu0 %767 }
 0x494   :  { %v776_v41 = vsel %vm403_vm10, %v768_v40, 0 }
 0x497   :  { %v952_v42 = vpop.permute.xlu0 %951 }
 0x498   :  { %v1394_v7 = vpop.eup %1393  ;;  %v959_v44 = vsel %vm403_vm10, %v952_v42, 0 }
 0x499   :  { %v593_v8 = vsel %vm74_vm0, %v1394_v7, 0.0 }
 0x49a   :  { %v1396_v10 = vpop.eup %1395  ;;  %594 = vadd.xlane.f32.xlu1 %v593_v8 }
 0x49b   :  { %v596_v11 = vsel %vm74_vm0, %v1396_v10, 0.0  ;;  %v950_v14 = vpop.permute.xlu0 %949 }
 0x49e   :  { %597 = vadd.xlane.f32.xlu1 %v596_v11 }
 0x4af   :  { %606 = vrot.lane.b32.xlu1 %v1684_v23, %s1448_s14 }
 0x4b3   :  { %659 = vrot.lane.b32.xlu1 %v1707_v24, %s1448_s14 }
 0x4b7   :  { %661 = vrot.lane.b32.xlu1 %v1721_v47, %s1448_s14 }
 0x4bb   :  { %765 = vrot.lane.b32.xlu1 %v1629_v5, %s1449_s7 }
 0x4bf   :  { %763 = vrot.lane.b32.xlu1 %v1633_v9, %s1449_s7 }
 0x4c0   :  { %v756_v12 = vpop.f32.mrb[16].mxu0 }
 0x4c1   :  { %v1315_v13 = vpop.f32.mrb[17].mxu0 }
 0x4c2   :  { %v759_v15 = vpop.f32.mrb[18].mxu0 }
 0x4c3   :  { %953 = vrot.lane.b32.xlu1 %v1627_v4, %s1450_s22  ;;  %v1316_v30 = vpop.f32.mrb[19].mxu0 }
 0x527   :  { %v595_v16 = vpop.xlane.xlu1 %594 }
 0x528   :  { %1397 = vrcp.f32 %v595_v16 }
 0x52b   :  { %v598_v17 = vpop.xlane.xlu1 %597 }
 0x52c   :  { %1399 = vrcp.f32 %v598_v17 }
 0x52f   :  { %v607_v20 = vpop.permute.xlu1 %606 }
 0x530   :  { %1294 = vmatpush3.bf16.msra.mxu1 %v607_v20 }
 0x531   :  { %1295 = vmatprep.subr.bf16.mxu1 %v1441_v6 }
 0x532   :  { %v1398_v5 = vpop.eup %1397 }
 0x533   :  { %v601_v27 = vmul.f32 %v1398_v5, %v1394_v7  ;;  %v660_v29 = vpop.permute.xlu1 %659 }
 0x534   :  { %1296 = vmatpush3.bf16.msra.mxu1 %v609_v25  ;;  %v667_v4 = vsel %vm403_vm10, %v660_v29, 0 }
 0x535   :  { %1301 = vmatprep.subr.bf16.mxu1 %v1441_v6 }
 0x536   :  { %v1400_v9 = vpop.eup %1399 }
 0x537   :  { %v602_v28 = vmul.f32 %v1400_v9, %v1396_v10  ;;  %v662_v32 = vpop.permute.xlu1 %661 }
 0x538   :  { %v670_v33 = vsel %vm403_vm10, %v662_v32, 0 }
 0x539   :  { %v603_v31 = vpack.c.bf16 %v602_v28, %v601_v27 }
 0x53b   :  { %1298 = vmatmul.mubr.msk.bf16.vlgmr.msra.gmra.mrb[12].mxu1 %vm74_vm0, %v603_v31  ;;  %v766_v38 = vpop.permute.xlu1 %765 }
 0x53c   :  { %1305 = vmatprep.mubr.msk.bf16.mxu1 %vm1442_vm1, %v1441_v6  ;;  %v773_v22 = vsel %vm403_vm10, %v766_v38, 0 }
 0x53d   :  { %1302 = vmatpush3.bf16.xpose.msra.mxu1 %v667_v4 }
 0x53e   :  { %1303 = vmatprep.subr.bf16.mxu1 %v1441_v6 }
 0x53f   :  { %v764_v43 = vpop.permute.xlu1 %763 }
 0x543   :  { %v954_v45 = vpop.permute.xlu1 %953 }
 0x544   :  { %v962_v46 = vsel %vm403_vm10, %v954_v45, 0 }
 0x545   :  { %1304 = vmatpush3.bf16.xpose.msra.mxu1 %v670_v33 }
 0x546   :  { %1317 = vmatprep.subr.bf16.mxu1 %v1441_v6 }
 0x60e   :  { %v649_v35 = vpop.f32.mrb[12].mxu1 }
 0x60f   :  { %v1299_v36 = vpop.f32.mrb[13].mxu1 }
 0x610   :  { %v652_v39 = vpop.f32.mrb[14].mxu1 }
 0x611   :  { %v656_v18 = vpack.c.bf16 %v652_v39, %v649_v35  ;;  %v1300_v19 = vpop.f32.mrb[15].mxu1 }
 0x613   :  { %1306 = vmatmul.mubr.msk.bf16.vlgmr.msra.gmra.mrb[16].mxu1 %vm403_vm10, %v656_v18 }
 0x614   :  { %1318 = vmatpush3.bf16.xpose.msra.mxu1 %v773_v22  ;;  %1321 = vmatprep.mubr.msk.bf16.mxu1 %vm1442_vm1, %v1441_v6 }
 0x615   :  { %1319 = vmatprep.subr.bf16.mxu1 %v1441_v6 }
 0x61c   :  { %1320 = vmatpush3.bf16.xpose.msra.mxu1 %v776_v41 }
 0x61d   :  { %1341 = vmatprep.subr.bf16.mxu1 %v1441_v6 }
 0x623   :  { %1322 = vmatmul.mubr.msk.bf16.vlgmr.msra.gmra.mrb[20].mxu1 %vm403_vm10, %v764_v43 }
 0x624   :  { %1342 = vmatpush3.bf16.xpose.msra.mxu1 %v959_v44  ;;  %1345 = vmatprep.mubr.msk.bf16.mxu1 %vm1442_vm1, %v1441_v6 }
 0x625   :  { %1343 = vmatprep.subr.bf16.mxu1 %v1441_v6 }
 0x62c   :  { %1344 = vmatpush3.bf16.xpose.msra.mxu1 %v962_v46 }
 0x62d   :  { %1357 = vmatprep.subr.bf16.mxu1 %v1441_v6 }
 0x633   :  { %1346 = vmatmul.mubr.msk.bf16.vlgmr.msra.gmra.mrb[24].mxu1 %vm403_vm10, %v950_v14 }
 0x634   :  { %1361 = vmatprep.mubr.msk.bf16.mxu1 %vm1442_vm1, %v1441_v6 }
 0x6e6   :  { %v706_v48 = vpop.f32.mrb[16].mxu1 }
 0x6e7   :  { %v1781_v49 = vadd.f32 %v756_v12, %v706_v48  ;;  %v1307_v50 = vpop.f32.mrb[17].mxu1 }
 0x6e8   :  { %v709_v51 = vpop.f32.mrb[18].mxu1 }
 0x6e9   :  { %v1783_v52 = vadd.f32 %v759_v15, %v709_v51  ;;  %v1308_v26 = vpop.f32.mrb[19].mxu1 }
 0x6f6   :  { %v812_v53 = vpop.f32.mrb[20].mxu1 }
 0x6f7   :  { %v813_v55 = vadd.f32 %v812_v53, %v1669_v54  ;;  %v1323_v56 = vpop.f32.mrb[21].mxu1 }
 0x6f8   :  { %v815_v57 = vpop.f32.mrb[22].mxu1 }
 0x6f9   :  { %v816_v59 = vadd.f32 %v815_v57, %v1672_v58  ;;  %v1324_v60 = vpop.f32.mrb[23].mxu1  ;;  %v819_v61 = vsel %vm74_vm0, %v813_v55, -inf }
 0x6fa   :  { %820 = vmax.xlane.f32.xlu1 %v819_v61 }
 0x6fb   :  { %v822_v62 = vsel %vm74_vm0, %v816_v59, -inf }
 0x6fc   :  { %823 = vmax.xlane.f32.xlu0 %v822_v62 }
 0x706   :  { %v998_v63 = vpop.f32.mrb[24].mxu1 }
 0x707   :  { %v1347_v0 = vpop.f32.mrb[25].mxu1  ;;  %v999_v20 = vadd.f32 %v998_v63, %v1669_v54 }
 0x708   :  { %v1001_v1 = vpop.f32.mrb[26].mxu1 }
 0x709   :  { %v1348_v2 = vpop.f32.mrb[27].mxu1  ;;  %v1002_v17 = vadd.f32 %v1001_v1, %v1672_v58  ;;  %v1005_v5 = vsel %vm74_vm0, %v999_v20, -inf }
 0x70b   :  { %v1008_v25 = vsel %vm74_vm0, %v1002_v17, -inf }
 0x787   :  { %v821_v3 = vpop.xlane.xlu1 %820 }
 0x788   :  { %v825_v7 = vsub.f32 %v813_v55, %v821_v3 }
 0x789   :  { %v824_v8 = vpop.xlane.xlu0 %823 }
 0x78a   :  { %v827_v10 = vmul.f32 1.442695, %v825_v7  ;;  %v826_v11 = vsub.f32 %v816_v59, %v824_v8 }
 0x78c   :  { %1401 = vpow2.f32 %v827_v10  ;;  %v829_v12 = vmul.f32 1.442695, %v826_v11 }
 0x78e   :  { %1403 = vpow2.f32 %v829_v12 }
 0x796   :  { %v1402_v13 = vpop.eup %1401 }
 0x797   :  { %v831_v15 = vsel %vm74_vm0, %v1402_v13, 0.0 }
 0x798   :  { %v1404_v30 = vpop.eup %1403  ;;  %832 = vadd.xlane.f32.xlu0 %v831_v15  ;;  %v1187_v15 = vld [vmem:[%s1860_s8] ss:$0 sm:$0xff] }
 0x799   :  { %v834_v16 = vsel %vm74_vm0, %v1404_v30, 0.0 }
 0x79a   :  { %835 = vadd.xlane.f32.xlu1 %v834_v16 }
 0x7ab   :  { %844 = vrot.lane.b32.xlu1 %v1682_v21, %s1449_s7 }
 0x7ae   :  { %842 = vrot.lane.b32.xlu0 %v1684_v23, %s1449_s7 }
 0x7cd   :  { %1009 = vmax.xlane.f32.xlu0 %v1008_v25 }
 0x7cf   :  { %1006 = vmax.xlane.f32.xlu1 %v1005_v5 }
 0x7e0   :  { %895 = vrot.lane.b32.xlu1 %v1721_v47, %s1449_s7 }
 0x7e3   :  { %893 = vrot.lane.b32.xlu0 %v1707_v24, %s1449_s7 }
 0x825   :  { %v833_v9 = vpop.xlane.xlu0 %832 }
 0x826   :  { %1405 = vrcp.f32 %v833_v9 }
 0x827   :  { %v836_v27 = vpop.xlane.xlu1 %835 }
 0x828   :  { %1407 = vrcp.f32 %v836_v27 }
 0x829   :  { %v843_v28 = vpop.permute.xlu0 %842 }
 0x82a   :  { %1326 = vmatpush3.bf16.msra.mxu0 %v843_v28 }
 0x82b   :  { %1327 = vmatprep.subr.bf16.mxu0 %v1441_v6  ;;  %v845_v54 = vpop.permute.xlu1 %844 }
 0x82e   :  { %1328 = vmatpush3.bf16.msra.mxu0 %v845_v54 }
 0x82f   :  { %1333 = vmatprep.subr.bf16.mxu0 %v1441_v6 }
 0x830   :  { %v1406_v58 = vpop.eup %1405 }
 0x831   :  { %v839_v31 = vmul.f32 %v1406_v58, %v1402_v13 }
 0x832   :  { %v1408_v29 = vpop.eup %1407 }
 0x833   :  { %v840_v4 = vmul.f32 %v1408_v29, %v1404_v30 }
 0x835   :  { %v841_v32 = vpack.c.bf16 %v840_v4, %v839_v31 }
 0x837   :  { %1330 = vmatmul.mubr.msk.bf16.vlgmr.msra.gmra.mrb[20].mxu0 %vm74_vm0, %v841_v32 }
 0x838   :  { %1337 = vmatprep.mubr.msk.bf16.mxu0 %vm1442_vm1, %v1441_v6 }
 0x85a   :  { %v1010_v33 = vpop.xlane.xlu0 %1009 }
 0x85b   :  { %v1012_v35 = vsub.f32 %v1002_v17, %v1010_v33 }
 0x85c   :  { %v1007_v36 = vpop.xlane.xlu1 %1006 }
 0x85d   :  { %v1015_v38 = vmul.f32 1.442695, %v1012_v35  ;;  %v1011_v39 = vsub.f32 %v999_v20, %v1007_v36 }
 0x85e   :  { %v894_v18 = vpop.permute.xlu0 %893 }
 0x85f   :  { %1409 = vpow2.f32 %v1015_v38  ;;  %v1013_v19 = vmul.f32 1.442695, %v1011_v39  ;;  %v901_v22 = vsel %vm403_vm10, %v894_v18, 0 }
 0x860   :  { %1334 = vmatpush3.bf16.xpose.msra.mxu0 %v901_v22  ;;  %v896_v40 = vpop.permute.xlu1 %895 }
 0x861   :  { %1411 = vpow2.f32 %v1013_v19  ;;  %1335 = vmatprep.subr.bf16.mxu0 %v1441_v6  ;;  %v904_v41 = vsel %vm403_vm10, %v896_v40, 0 }
 0x868   :  { %1336 = vmatpush3.bf16.xpose.msra.mxu0 %v904_v41 }
 0x869   :  { %v1410_v42 = vpop.eup %1409  ;;  %1349 = vmatprep.subr.bf16.mxu0 %v1441_v6 }
 0x86a   :  { %v1020_v43 = vsel %vm74_vm0, %v1410_v42, 0.0 }
 0x86b   :  { %v1412_v44 = vpop.eup %1411  ;;  %1021 = vadd.xlane.f32.xlu1 %v1020_v43 }
 0x86c   :  { %v1017_v45 = vsel %vm74_vm0, %v1412_v44, 0.0 }
 0x86d   :  { %1018 = vadd.xlane.f32.xlu0 %v1017_v45 }
 0x87c   :  { %1028 = vrot.lane.b32.xlu1 %v1684_v23, %s1450_s22 }
 0x880   :  { %1079 = vrot.lane.b32.xlu1 %v1707_v24, %s1450_s22 }
 0x883   :  { %1030 = vrot.lane.b32.xlu0 %v1682_v21, %s1450_s22 }
 0x887   :  { %1081 = vrot.lane.b32.xlu0 %v1721_v47, %s1450_s22 }
 0x8f8   :  { %v1022_v46 = vpop.xlane.xlu1 %1021 }
 0x8fa   :  { %v1019_v50 = vpop.xlane.xlu0 %1018 }
 0x8fb   :  { %1413 = vrcp.f32 %v1019_v50 }
 0x8fc   :  { %v1029_v14 = vpop.permute.xlu1 %1028  ;;  %1415 = vrcp.f32 %v1022_v46 }
 0x8fe   :  { %v1031_v59 = vpop.permute.xlu0 %1030 }
 0x900   :  { %v1080_v48 = vpop.permute.xlu1 %1079 }
 0x901   :  { %v1087_v51 = vsel %vm403_vm10, %v1080_v48, 0 }
 0x902   :  { %1358 = vmatpush3.bf16.xpose.msra.mxu1 %v1087_v51  ;;  %v1082_v61 = vpop.permute.xlu0 %1081 }
 0x903   :  { %1359 = vmatprep.subr.bf16.mxu1 %v1441_v6  ;;  %v1090_v62 = vsel %vm403_vm10, %v1082_v61, 0 }
 0x905   :  { %v1414_v21 = vpop.eup %1413 }
 0x906   :  { %v1416_v47 = vpop.eup %1415  ;;  %v1025_v56 = vmul.f32 %v1414_v21, %v1412_v44 }
 0x907   :  { %v1026_v57 = vmul.f32 %v1416_v47, %v1410_v42 }
 0x909   :  { %v1027_v60 = vpack.c.bf16 %v1026_v57, %v1025_v56 }
 0x90a   :  { %v885_v23 = vpop.f32.mrb[20].mxu0  ;;  %1360 = vmatpush3.bf16.xpose.msra.mxu1 %v1090_v62 }
 0x90b   :  { %v1331_v26 = vpop.f32.mrb[21].mxu0 }
 0x90c   :  { %v888_v24 = vpop.f32.mrb[22].mxu0 }
 0x90d   :  { %v892_v53 = vpack.c.bf16 %v888_v24, %v885_v23  ;;  %v1332_v55 = vpop.f32.mrb[23].mxu0 }
 0x90f   :  { %1338 = vmatmul.mubr.msk.bf16.vlgmr.msra.gmra.mrb[24].mxu0 %vm403_vm10, %v892_v53 }
 0x910   :  { %1350 = vmatpush3.bf16.msra.mxu0 %v1029_v14  ;;  %1353 = vmatprep.mubr.msk.bf16.mxu0 %vm1442_vm1, %v1441_v6 }
 0x911   :  { %1351 = vmatprep.subr.bf16.mxu0 %v1441_v6 }
 0x914   :  { %1352 = vmatpush3.bf16.msra.mxu0 %v1031_v59 }
 0x917   :  { %1354 = vmatmul.mubr.msk.bf16.vlgmr.msra.gmra.mrb[28].mxu0 %vm74_vm0, %v1027_v60 }
 0x9e2   :  { %v940_v63 = vpop.f32.mrb[24].mxu0 }
 0x9e3   :  { %v947_v0 = vadd.f32 %v940_v63, %v1781_v49  ;;  %v1339_v1 = vpop.f32.mrb[25].mxu0 }
 0x9e4   :  { %v943_v2 = vpop.f32.mrb[26].mxu0 }
 0x9e5   :  { %v948_v3 = vadd.f32 %v943_v2, %v1783_v52  ;;  %v1340_v7 = vpop.f32.mrb[27].mxu0 }
 0x9ea   :  { %v1071_v8 = vpop.f32.mrb[28].mxu0 }
 0x9eb   :  { %v1355_v6 = vpop.f32.mrb[29].mxu0 }
 0x9ec   :  { %v1074_v10 = vpop.f32.mrb[30].mxu0 }
 0x9ed   :  { %v1078_v11 = vpack.c.bf16 %v1074_v10, %v1071_v8  ;;  %v1356_v12 = vpop.f32.mrb[31].mxu0 }
 0x9ef   :  { %1362 = vmatmul.mubr.msk.bf16.vlgmr.msra.gmra.mrb[28].mxu1 %vm403_vm10, %v1078_v11 }
 0xac2   :  { %v1126_v13 = vpop.f32.mrb[28].mxu1 }
 0xac3   :  { %v1133_v30 = vadd.f32 %v1126_v13, %v947_v0  ;;  %v1363_v16 = vpop.f32.mrb[29].mxu1 }
 0xac4   :  { %v1129_v49 = vpop.f32.mrb[30].mxu1 }
 0xac5   :  { %v1142_v17 = vadd.f32 %v1187_v15, %v1133_v30  ;;  %v1134_v20 = vadd.f32 %v1129_v49, %v948_v3  ;;  %v1364_v25 = vpop.f32.mrb[31].mxu1 }
 0xac7   :  { %v1144_v52 = vmul.f32 %v1142_v17, %v1591_v34  ;;  %v1143_v5 = vadd.f32 %v1187_v15, %v1134_v20 }
 0xac9   :  { %1146 = vst.msk [vmem:[#allocation2] sm:$0xff] %vm74_vm0, %v1144_v52  ;;  %v1145_v9 = vmul.f32 %v1143_v5, %v1598_v37 }
 0xacb   :  { %1147 = vst.msk [vmem:[#allocation2 + $0x8] sm:$0xff] %vm74_vm0, %v1145_v9 }
 0xacc   :  { %1428 = shalt.err (!%p1425_p4)
}
 0xacd   :  { %s1429_s3 = scalar_lea.hbm %s1861_s9, 256 }
 0xace   :  { %p1430_p5 = scmp.ne.s32.totalorder %s1861_s9, %s1429_s3  ;;  %p1433_p6 = scmp.lt.u32.totalorder %s1429_s3, %s1861_s9 }
 0xad0   :  { %p1435_p7 = pnand %p1433_p6, %p1430_p5 }
 0xad2   :  { %1438 = shalt.err (!%p1435_p7)
}
 0xad3   :  { %s1452_s29 = smov 128   ;;  %s1453_s30 = smov 8  }
 0xad4   :  { %1159 = dma.vmem_to_hbm [thread:$0]  %s1154_s25, 256, %s1861_s9, [#allocation3], %s1452_s29, %s1452_s29, %s1453_s30  }
 0xad5   :  { %1439 = dma.done.wait [#allocation3], 256  }
 0xad6   :  { %1440 = vsyncadd [#allocation3], 4294967040 }
 0xad7   :  { %1163 = vsyncpa [#allocation3], 1 }

</bundles_post_ra>
